<compile_context>
chip_gen: v7x
topology: tpu7x:2x2x1
jax: 0.10.0
libtpu: 0.0.40
codegen_flags: <defaults>
</compile_context>

<pallas_src>
import jax
import jax.numpy as jnp
from jax import lax
from jax.experimental import pallas as pl
from jax.experimental.pallas import tpu as pltpu


def _make_kernel(use_relu: bool):
    def kernel(x_ref, w_ref, len_ref, rep_ref, sc_ref):
        """One grid step = BB batch rows.

        x_ref   : VMEM (BB, T, H) f32   (streamed)
        w_ref   : VMEM (1, H)     f32   (resident across steps)
        len_ref : VMEM (BB, 1)    i32
        rep_ref : VMEM (BB, H)    f32
        sc_ref  : VMEM (BB, T)    f32
        """
        x = x_ref[...]                                   # (BB,T,H): T->sublane, H->lane
        w = w_ref[...]                                   # (1, H)
        bb, t, _ = x.shape

        # scores = non_linearity(inputs @ attention_weights)
        # VPU broadcast-multiply + lane reduce over H; keepdims keeps T on sublanes.
        s = jnp.sum(x * w, axis=-1, keepdims=True)       # (BB, T, 1)
        s = jnp.maximum(s, 0.0) if use_relu else jnp.tanh(s)

        # softmax -> mask -> renormalize == exp(s-m)*mask / sum(exp(s-m)*mask)
        m = jnp.max(s, axis=1, keepdims=True)            # (BB, 1, 1) sublane reduce
        e = jnp.exp(s - m)                               # (BB, T, 1)
        col = lax.broadcasted_iota(jnp.int32, (bb, t, 1), 1)
        lens = len_ref[...].reshape(bb, 1, 1)
        e = e * (col < lens).astype(e.dtype)
        denom = jnp.sum(e, axis=1, keepdims=True)        # (BB, 1, 1)
        # NOTE: matches the PyTorch reference -- a row with length 0 divides by 0.
        # EUP approx reciprocal + one Newton step (2 VPU ops on a tiny (BB,1,1) array).
        r = pl.reciprocal(denom, approx=True)
        inv = r * (2.0 - denom * r)
        scores = e * inv                                 # (BB, T, 1)

        # weighted sum over T: lane-broadcast of scores + sublane reduce.
        rep = jnp.sum(x * scores, axis=1)                # (BB, H)

        rep_ref[...] = rep.astype(rep_ref.dtype)
        sc_ref[...] = jnp.squeeze(scores, axis=-1).astype(sc_ref.dtype)

    return kernel


def _choose_tiling(B, T, H):
    """Generation-aware batch tile + scoped-VMEM limit."""
    try:
        vmem_cap = int(pltpu.get_tpu_info().vmem_capacity_bytes)
    except Exception:
        vmem_cap = 64 << 20               # v7x per-TC size; conservative everywhere
    # Budget ~5 live copies of the x tile (2 pipeline buffers + f32 elementwise temps).
    target_tile_bytes = max(512 << 10, min(8 << 20, vmem_cap // 20))
    row_bytes = T * H * 4
    bb = max(8, target_tile_bytes // row_bytes)
    bb = min(bb, -(-B // 8) * 8)          # never exceed the (padded) batch
    bb = max(8, (bb // 8) * 8)            # sublane-aligned (BB,H)/(BB,T) blocks
    vmem_limit = int(min(vmem_cap * 3 // 4, 96 << 20))
    return int(bb), vmem_limit


def self_attention(inputs, lengths, attention_weights, non_linearity="tanh"):
    """inputs: (B, T, H) f32, lengths: (B,) int, attention_weights: (H,) f32."""
    B, T, H = inputs.shape
    bb, vmem_limit = _choose_tiling(B, T, H)
    num_blocks = -(-B // bb)
    B_pad = num_blocks * bb

    if B_pad != B:
        pad = B_pad - B
        inputs = jnp.pad(inputs, ((0, pad), (0, 0), (0, 0)))
        # padded rows get full length (any valid value; they are sliced off below)
        lengths = jnp.concatenate(
            [lengths, jnp.full((pad,), T, dtype=lengths.dtype)])

    lens = lengths.astype(jnp.int32).reshape(B_pad, 1)
    w2d = attention_weights.reshape(1, H).astype(inputs.dtype)

    cost = pl.CostEstimate(
        flops=int(4 * B_pad * T * H),
        transcendentals=int(2 * B_pad * T),
        bytes_accessed=int(4 * (B_pad * T * H + B_pad * H + 2 * B_pad * T + H + B_pad)),
    )

    reps, scores = pl.pallas_call(
        _make_kernel(non_linearity == "relu"),
        out_shape=(
            jax.ShapeDtypeStruct((B_pad, H), inputs.dtype),
            jax.ShapeDtypeStruct((B_pad, T), inputs.dtype),
        ),
        grid_spec=pltpu.PrefetchScalarGridSpec(
            num_scalar_prefetch=0,
            grid=(num_blocks,),
            in_specs=[
                pl.BlockSpec((bb, T, H), lambda b: (b, 0, 0)),   # inputs (streamed)
                pl.BlockSpec((1, H), lambda b: (0, 0)),          # weights (resident)
                pl.BlockSpec((bb, 1), lambda b: (b, 0)),         # lengths (tiny)
            ],
            out_specs=[
                pl.BlockSpec((bb, H), lambda b: (b, 0)),         # representations
                pl.BlockSpec((bb, T), lambda b: (b, 0)),         # scores
            ],
        ),
        compiler_params=pltpu.CompilerParams(
            dimension_semantics=("parallel",),
            vmem_limit_bytes=vmem_limit,
        ),
        cost_estimate=cost,
    )(inputs, w2d, lens)

    return reps[:B], scores[:B]


def _reference(inputs, lengths, w):
    # pure-JAX mirror of the PyTorch forward, for a correctness check
    s = jnp.tanh(inputs @ w)
    p = jax.nn.softmax(s, axis=-1)
    T = inputs.shape[1]
    mask = (jnp.arange(T)[None, :] < lengths[:, None]).astype(p.dtype)
    mp = p * mask
    sc = mp / jnp.sum(mp, axis=-1, keepdims=True)
    rep = jnp.sum(inputs * sc[..., None], axis=1)
    return rep, sc


if __name__ == "__main__":
    B, T, H = 16, 8, 32  # batch, seq, hidden (attention_size = H)

    key = jax.random.PRNGKey(0)
    k_x, k_w = jax.random.split(key)
    inputs = jax.random.normal(k_x, (B, T, H), dtype=jnp.float32)
    # init.uniform(self.attention_weights, -0.005, 0.005)
    attention_weights = jax.random.uniform(
        k_w, (H,), dtype=jnp.float32, minval=-0.005, maxval=0.005)
    # a mix of full and padded sequences
    lengths = jnp.array([T, 5, 3, T, 7, 2, T, 6,
                         4, T, 1, 8, 5, T, 3, 7], dtype=jnp.int32)

    reps, scores = self_attention(inputs, lengths, attention_weights)
    reps = jax.block_until_ready(reps)
    scores = jax.block_until_ready(scores)

    ref_reps, ref_scores = _reference(inputs, lengths, attention_weights)
    assert reps.shape == (B, H) and scores.shape == (B, T)
    # tolerance accounts for the EUP approx reciprocal (+ Newton step) in the renorm
    assert jnp.allclose(reps, ref_reps, atol=1e-4, rtol=1e-3)
    assert jnp.allclose(scores, ref_scores, atol=1e-4, rtol=1e-3)

    print("KERNEL_OK")
</pallas_src>

<mosaic_0001>
module attributes {stable_mosaic.version = 11 : i64} {
  func.func @kernel(%arg0: i32, %arg1: memref<16x8x32xf32, #tpu.memory_space<vmem>>, %arg2: memref<1x32xf32, #tpu.memory_space<vmem>>, %arg3: memref<16x1xi32, #tpu.memory_space<vmem>>, %arg4: memref<16x32xf32, #tpu.memory_space<vmem>>, %arg5: memref<16x8xf32, #tpu.memory_space<vmem>>) attributes {dimension_semantics = [#tpu.dimension_semantics<parallel>], iteration_bounds = array<i64: 1>, scalar_prefetch = 0 : i64, scratch_operands = 0 : i64, tpu.core_type = #tpu.core_type<tc>, window_params = [{transform_indices = @transform_0, window_bounds = array<i64: 16, 8, 32>}, {pipeline_mode = #tpu.pipeline_mode<synchronous>, transform_indices = @transform_1, window_bounds = array<i64: 1, 32>}, {transform_indices = @transform_2, window_bounds = array<i64: 16, 1>}, {transform_indices = @transform_3, window_bounds = array<i64: 16, 32>}, {transform_indices = @transform_4, window_bounds = array<i64: 16, 8>}]} {
    %c0 = arith.constant 0 : index
    %c0_0 = arith.constant 0 : index
    %c0_1 = arith.constant 0 : index
    %0 = vector.load %arg1[%c0, %c0_0, %c0_1] : memref<16x8x32xf32, #tpu.memory_space<vmem>>, vector<16x8x32xf32>
    %c0_2 = arith.constant 0 : index
    %c0_3 = arith.constant 0 : index
    %1 = vector.load %arg2[%c0_2, %c0_3] : memref<1x32xf32, #tpu.memory_space<vmem>>, vector<1x32xf32>
    %2 = vector.shape_cast %1 : vector<1x32xf32> to vector<1x1x32xf32>
    %3 = vector.broadcast %2 : vector<1x1x32xf32> to vector<16x8x32xf32>
    %4 = arith.mulf %0, %3 : vector<16x8x32xf32>
    %cst = arith.constant dense<0.000000e+00> : vector<16x8xf32>
    %5 = vector.multi_reduction <add>, %4, %cst [2] : vector<16x8x32xf32> to vector<16x8xf32>
    %6 = vector.shape_cast %5 : vector<16x8xf32> to vector<16x8x1xf32>
    %7 = math.tanh %6 : vector<16x8x1xf32>
    %cst_4 = arith.constant dense<0xFF800000> : vector<16x1xf32>
    %8 = vector.multi_reduction <maximumf>, %7, %cst_4 [1] : vector<16x8x1xf32> to vector<16x1xf32>
    %9 = vector.shape_cast %8 : vector<16x1xf32> to vector<16x1x1xf32>
    %10 = vector.broadcast %9 : vector<16x1x1xf32> to vector<16x8x1xf32>
    %11 = arith.subf %7, %10 : vector<16x8x1xf32>
    %12 = math.exp %11 : vector<16x8x1xf32>
    %13 = tpu.iota {dimensions = array<i32: 1>} : vector<16x8x1xi32>
    %c0_5 = arith.constant 0 : index
    %c0_6 = arith.constant 0 : index
    %14 = vector.load %arg3[%c0_5, %c0_6] : memref<16x1xi32, #tpu.memory_space<vmem>>, vector<16x1xi32>
    %15 = vector.shape_cast %14 : vector<16x1xi32> to vector<16x1x1xi32>
    %16 = vector.broadcast %15 : vector<16x1x1xi32> to vector<16x8x1xi32>
    %17 = arith.cmpi slt, %13, %16 : vector<16x8x1xi32>
    %18 = arith.extui %17 : vector<16x8x1xi1> to vector<16x8x1xi32>
    %19 = arith.sitofp %18 : vector<16x8x1xi32> to vector<16x8x1xf32>
    %20 = arith.mulf %12, %19 : vector<16x8x1xf32>
    %cst_7 = arith.constant dense<0.000000e+00> : vector<16x1xf32>
    %21 = vector.multi_reduction <add>, %20, %cst_7 [1] : vector<16x8x1xf32> to vector<16x1xf32>
    %22 = vector.shape_cast %21 : vector<16x1xf32> to vector<16x1x1xf32>
    %23 = tpu.reciprocal %22 {approx = true} : vector<16x1x1xf32> -> vector<16x1x1xf32>
    %24 = arith.mulf %22, %23 : vector<16x1x1xf32>
    %cst_8 = arith.constant 2.000000e+00 : f32
    %25 = vector.broadcast %cst_8 : f32 to vector<16x1x1xf32>
    %26 = arith.subf %25, %24 : vector<16x1x1xf32>
    %27 = arith.mulf %23, %26 : vector<16x1x1xf32>
    %28 = vector.broadcast %27 : vector<16x1x1xf32> to vector<16x8x1xf32>
    %29 = arith.mulf %20, %28 : vector<16x8x1xf32>
    %30 = vector.broadcast %29 : vector<16x8x1xf32> to vector<16x8x32xf32>
    %31 = arith.mulf %0, %30 : vector<16x8x32xf32>
    %cst_9 = arith.constant dense<0.000000e+00> : vector<16x32xf32>
    %32 = vector.multi_reduction <add>, %31, %cst_9 [1] : vector<16x8x32xf32> to vector<16x32xf32>
    %c0_10 = arith.constant 0 : index
    %c0_11 = arith.constant 0 : index
    %33 = vector.load %arg4[%c0_10, %c0_11] : memref<16x32xf32, #tpu.memory_space<vmem>>, vector<16x32xf32>
    tpu.vector_store %arg4[%c0_10, %c0_11], %32 {strides = array<i32>} : memref<16x32xf32, #tpu.memory_space<vmem>>, vector<16x32xf32>,
    %34 = vector.shape_cast %29 : vector<16x8x1xf32> to vector<16x8xf32>
    %c0_12 = arith.constant 0 : index
    %c0_13 = arith.constant 0 : index
    %35 = vector.load %arg5[%c0_12, %c0_13] : memref<16x8xf32, #tpu.memory_space<vmem>>, vector<16x8xf32>
    tpu.vector_store %arg5[%c0_12, %c0_13], %34 {strides = array<i32>} : memref<16x8xf32, #tpu.memory_space<vmem>>, vector<16x8xf32>,
    return
  }
  func.func @transform_0(%arg0: i32) -> (i32, i32, i32) {
    %c0_i32 = arith.constant 0 : i32
    %c0_i32_0 = arith.constant 0 : i32
    %c0_i32_1 = arith.constant 0 : i32
    return %arg0, %c0_i32, %c0_i32_0 : i32, i32, i32
  }
  func.func @transform_1(%arg0: i32) -> (i32, i32) {
    %c0_i32 = arith.constant 0 : i32
    %c0_i32_0 = arith.constant 0 : i32
    %c0_i32_1 = arith.constant 0 : i32
    return %c0_i32, %c0_i32_0 : i32, i32
  }
  func.func @transform_2(%arg0: i32) -> (i32, i32) {
    %c0_i32 = arith.constant 0 : i32
    %c0_i32_0 = arith.constant 0 : i32
    return %arg0, %c0_i32 : i32, i32
  }
  func.func @transform_3(%arg0: i32) -> (i32, i32) {
    %c0_i32 = arith.constant 0 : i32
    %c0_i32_0 = arith.constant 0 : i32
    return %arg0, %c0_i32 : i32, i32
  }
  func.func @transform_4(%arg0: i32) -> (i32, i32) {
    %c0_i32 = arith.constant 0 : i32
    %c0_i32_0 = arith.constant 0 : i32
    return %arg0, %c0_i32 : i32, i32
  }
}

</mosaic_0001>

<bundles_post_ra>
// kernel: tpu_custom_call.1
= control target key start
LH: loop header
LB: loop body
LE: loop exit
PB: predicated region body
PF: predicated region fallthrough
CT: control target
= control target key end

     0   :  { %10 = vsyncpa [#allocation3], 0  ;;  %s1810_s0 = inlined_call_operand.hbm [shape: f32[16,8,32], index: 0, kind: input, shape index: {}]   ;;  %s1811_s1 = inlined_call_operand.vmem [shape: f32[1,32], index: 1, kind: input, shape index: {}]   ;;  %s1812_s2 = inlined_call_operand.vmem [shape: s32[16,1], index: 2, kind: input, shape index: {}]   ;;  %s1813_s3 = inlined_call_operand.hbm [shape: f32[16,32], index: 3, kind: output, shape index: {0}]   ;;  %s1814_s4 = inlined_call_operand.vmem [shape: f32[16,8], index: 4, kind: output, shape index: {1}]  }
   0x1   :  { %11 = vsyncpa [#allocation4], 0  ;;  %s1245_s15 = smov [#allocation2]   ;;  %s1197_s19 = scalar_lea.hbm %s1810_s0, 2048 }
   0x2   :  { %s17_s16 = sshll.u32 %s1245_s15, 4  ;;  %p1198_p0 = scmp.ne.s32.totalorder %s1810_s0, %s1197_s19  ;;  %s18_s16 = int_to_ptr.vmem [resolvable:$true] %s17_s16 }
   0x3   :  { %p1201_p1 = scmp.lt.u32.totalorder %s1197_s19, %s1810_s0 }
   0x5   :  { %p1203_p2 = pnand %p1201_p1, %p1198_p0 }
   0x7   :  { %1206 = shalt.err (!%p1203_p2)
}
   0x8   :  { %s1207_s24 = scalar_lea.vmem %s18_s16, 2048  ;;  %p1212_p4 = scmp.lt.s32.totalorder %s18_s16, %s18_s16 }
   0x9   :  { %p1208_p3 = scmp.ne.s32.totalorder %s18_s16, %s1207_s24  ;;  %p1213_p5 = scmp.lt.s32.totalorder %s1207_s24, %s1207_s24 }
   0xb   :  { %p1214_p6 = por %p1213_p5, %p1212_p4 }
   0xd   :  { %p1215_p7 = pnand %p1214_p6, %p1208_p3 }
   0xf   :  { %1218 = shalt.err (!%p1215_p7)
}
  0x10   :  { %s1246_s25 = smov 128   ;;  %s1247_s26 = smov 8  }
  0x11   :  { %23 = dma.hbm_to_vmem [thread:$0]  %s1810_s0, 2048, %s18_s16, [#allocation3], %s1246_s25, %s1246_s25, %s1247_s26  }
  0x12   :  { %1241 = dma.done.wait [#allocation3], 2048  }
  0x13   :  { %1242 = vsyncadd [#allocation3], 4294965248  ;;  %v39_v0 = vld [vmem:[#allocation2 + $0x40] sm:$0xff]  ;;  %vm70_vm0 = vcmask 261120   ;;  %v40_v5 = vld [vmem:[#allocation2 + $0x48] sm:$0xff]  ;;  %v1248_v49 = vmov 0   ;;  %v279_v50 = vlaneseq }
  0x14   :  { %v1057_v1 = vld [vmem:[%s1811_s1] ss:$0 sm:$0xff]  ;;  %v32_v6 = vld [vmem:[#allocation2 + $0x8] sm:$0xff]  ;;  %v41_v9 = vld [vmem:[#allocation2 + $0x50] sm:$0xff]  ;;  %1081 = vset.pattern.permute.xlu0 %v1248_v49  ;;  %1082 = vset.pattern.permute.xlu1 %v1248_v49  ;;  %v1249_v51 = vmov 1966171168  }
  0x15   :  { %v31_v2 = vld [vmem:[#allocation2] sm:$0xff]  ;;  %v62_v3 = vmul.f32 %v1057_v1, %v39_v0  ;;  %v63_v7 = vmul.f32 %v1057_v1, %v40_v5  ;;  %v55_v8 = vmul.f32 %v1057_v1, %v32_v6  ;;  %v33_v10 = vld [vmem:[#allocation2 + $0x10] sm:$0xff]  ;;  %v64_v15 = vmul.f32 %v1057_v1, %v41_v9  ;;  %v42_v17 = vld [vmem:[#allocation2 + $0x58] sm:$0xff] }
  0x16   :  { %v54_v4 = vmul.f32 %v1057_v1, %v31_v2  ;;  %v56_v16 = vmul.f32 %v1057_v1, %v33_v10  ;;  %v34_v18 = vld [vmem:[#allocation2 + $0x18] sm:$0xff]  ;;  %v65_v21 = vmul.f32 %v1057_v1, %v42_v17  ;;  %v43_v23 = vld [vmem:[#allocation2 + $0x60] sm:$0xff]  ;;  %v44_v29 = vld [vmem:[#allocation2 + $0x68] sm:$0xff]  ;;  %v285_v52 = vunpack.c.l.s4 %v1249_v51 }
  0x17   :  { %v95_v11 = vsel %vm70_vm0, %v62_v3, 0.0  ;;  %v98_v13 = vsel %vm70_vm0, %v63_v7, 0.0  ;;  %v74_v14 = vsel %vm70_vm0, %v55_v8, 0.0  ;;  %v101_v19 = vsel %vm70_vm0, %v64_v15, 0.0  ;;  %v35_v24 = vld [vmem:[#allocation2 + $0x20] sm:$0xff]  ;;  %v36_v30 = vld [vmem:[#allocation2 + $0x28] sm:$0xff] }
  0x18   :  { %v71_v12 = vsel %vm70_vm0, %v54_v4, 0.0  ;;  %96 = vadd.xlane.f32.xlu1 %v95_v11  ;;  %v77_v20 = vsel %vm70_vm0, %v56_v16, 0.0  ;;  %v57_v22 = vmul.f32 %v1057_v1, %v34_v18  ;;  %v104_v25 = vsel %vm70_vm0, %v65_v21, 0.0  ;;  %v45_v35 = vld [vmem:[#allocation2 + $0x70] sm:$0xff]  ;;  %v46_v41 = vld [vmem:[#allocation2 + $0x78] sm:$0xff]  ;;  %v1320_v56 = vld [vmem:[%s1812_s2] sm:$0xff] }
  0x19   :  { %72 = vadd.xlane.f32.xlu0 %v71_v12  ;;  %v66_v27 = vmul.f32 %v1057_v1, %v43_v23  ;;  %v58_v28 = vmul.f32 %v1057_v1, %v35_v24  ;;  %v67_v33 = vmul.f32 %v1057_v1, %v44_v29  ;;  %v59_v34 = vmul.f32 %v1057_v1, %v36_v30  ;;  %v37_v36 = vld [vmem:[#allocation2 + $0x30] sm:$0xff]  ;;  %v38_v42 = vld [vmem:[#allocation2 + $0x38] sm:$0xff]  ;;  %v282_v58 = vld [vmem:[%s1812_s2 + $0x8] sm:$0xff] }
  0x1a   :  { %v80_v26 = vsel %vm70_vm0, %v57_v22, 0.0  ;;  %v68_v39 = vmul.f32 %v1057_v1, %v45_v35  ;;  %v60_v40 = vmul.f32 %v1057_v1, %v37_v36  ;;  %v69_v45 = vmul.f32 %v1057_v1, %v46_v41 }
  0x1b   :  { %v107_v31 = vsel %vm70_vm0, %v66_v27, 0.0  ;;  %v83_v32 = vsel %vm70_vm0, %v58_v28, 0.0  ;;  %v110_v37 = vsel %vm70_vm0, %v67_v33, 0.0  ;;  %v86_v38 = vsel %vm70_vm0, %v59_v34, 0.0 }
  0x1c   :  { %99 = vadd.xlane.f32.xlu1 %v98_v13  ;;  %v113_v43 = vsel %vm70_vm0, %v68_v39, 0.0  ;;  %v89_v44 = vsel %vm70_vm0, %v60_v40, 0.0  ;;  %v61_v46 = vmul.f32 %v1057_v1, %v38_v42  ;;  %v116_v47 = vsel %vm70_vm0, %v69_v45, 0.0 }
  0x1d   :  { %75 = vadd.xlane.f32.xlu0 %v74_v14  ;;  %v1312_v53 = vshrl.u32 %v279_v50, 7  ;;  %v286_v54 = vunpack.c.0.s8 %v285_v52  ;;  %v332_v62 = vcombine.high %v282_v58, %v282_v58  ;;  %v1250_v27 = vmov 0.0  }
  0x1e   :  { %v92_v48 = vsel %vm70_vm0, %v61_v46, 0.0  ;;  %vm509_vm13 = vcmask 7168  }
  0x1f   :  { %v1315_v55 = vsub.s32 %v286_v54, %v1312_v53  ;;  %v1330_v61 = vsub.s32 0, %v1312_v53 }
  0x20   :  { %102 = vadd.xlane.f32.xlu1 %v101_v19 }
  0x21   :  { %78 = vadd.xlane.f32.xlu0 %v77_v20  ;;  %v290_v57 = vrot.slane %v1320_v56, %v1315_v55  ;;  %v339_v59 = vrot.slane %v282_v58, %v1315_v55  ;;  %v346_v3 = vrot.slane %v332_v62, %v1315_v55 }
  0x23   :  { %v306_v60 = vrot.slane %v290_v57, %v1315_v55  ;;  %v298_v63 = vcombine.high %v290_v57, %v290_v57  ;;  %v347_v0 = vcombine.high %v339_v59, %v339_v59  ;;  %v355_v2 = vrot.slane %v339_v59, %v1315_v55 }
  0x24   :  { %105 = vadd.xlane.f32.xlu1 %v104_v25  ;;  %v348_v9 = vcombine.high %v346_v3, %v346_v3  ;;  %v362_v18 = vrot.slane %v346_v3, %v1315_v55 }
  0x25   :  { %81 = vadd.xlane.f32.xlu0 %v80_v26  ;;  %v384_v1 = vrot.slane %v306_v60, %v1330_v61  ;;  %v320_v6 = vrot.slane %v298_v63, %v1315_v55  ;;  %v369_v7 = vrot.slane %v347_v0, %v1315_v55  ;;  %v328_v8 = vcombine.high %v306_v60, %v306_v60 }
  0x26   :  { %v377_v10 = vcombine.high %v355_v2, %v355_v2  ;;  %v416_v13 = vrot.slane %v355_v2, %v1330_v61  ;;  %v376_v20 = vrot.slane %v348_v9, %v1315_v55  ;;  %v378_v22 = vcombine.high %v362_v18, %v362_v18 }
  0x27   :  { %v330_v11 = vcombine.high %v320_v6, %v320_v6  ;;  %vm1338_vm1 = vcmp.lt.s32.totalorder %v1312_v53, %v384_v1  ;;  %v388_v16 = vrot.slane %v320_v6, %v1330_v61  ;;  %v420_v17 = vrot.slane %v369_v7, %v1330_v61 }
  0x28   :  { %108 = vadd.xlane.f32.xlu1 %v107_v31  ;;  %v392_v19 = vrot.slane %v328_v8, %v1330_v61  ;;  %v424_v21 = vrot.slane %v377_v10, %v1330_v61  ;;  %v380_v24 = vcombine.high %v376_v20, %v376_v20  ;;  %v1353_v28 = vsel %vm1338_vm1, 1.0, %v1250_v27 }
  0x29   :  { %84 = vadd.xlane.f32.xlu0 %v83_v32  ;;  %v396_v23 = vrot.slane %v330_v11, %v1330_v61  ;;  %vm1356_vm2 = vcmp.lt.s32.totalorder %v1312_v53, %v388_v16  ;;  %vm453_vm3 = vcmp.lt.s32.totalorder %v1312_v53, %v416_v13  ;;  %vm1362_vm4 = vcmp.lt.s32.totalorder %v1312_v53, %v420_v17 }
  0x2a   :  { %v432_v31 = vrot.slane %v362_v18, %v1330_v61  ;;  %vm447_vm5 = vcmp.lt.s32.totalorder %v1312_v53, %v392_v19  ;;  %vm455_vm6 = vcmp.lt.s32.totalorder %v1312_v53, %v424_v21  ;;  %v436_v32 = vrot.slane %v376_v20, %v1330_v61 }
  0x2b   :  { %v440_v33 = vrot.slane %v378_v22, %v1330_v61  ;;  %vm448_vm7 = vcmp.lt.s32.totalorder %v1312_v53, %v396_v23  ;;  %v1375_v35 = vsel %vm453_vm3, 1.0, %v1250_v27  ;;  %v444_v36 = vrot.slane %v380_v24, %v1330_v61 }
  0x2c   :  { %111 = vadd.xlane.f32.xlu1 %v110_v37  ;;  %v379_v37 = vcombine.high %v369_v7, %v369_v7  ;;  %v1396_v45 = vsel %vm447_vm5, 1.0, %v1250_v27  ;;  %vm1400_vm8 = vcmp.lt.s32.totalorder %v1312_v53, %v432_v31  ;;  %v1412_v49 = vsel %vm448_vm7, 1.0, %v1250_v27 }
  0x2d   :  { %87 = vadd.xlane.f32.xlu0 %v86_v38  ;;  %v283_v38 = vcombine.high %v1320_v56, %v1320_v56  ;;  %vm1416_vm9 = vcmp.lt.s32.totalorder %v1312_v53, %v436_v32  ;;  %vm459_vm10 = vcmp.lt.s32.totalorder %v1312_v53, %v440_v33  ;;  %vm460_vm11 = vcmp.lt.s32.totalorder %v1312_v53, %v444_v36 }
  0x2e   :  { %v428_v57 = vrot.slane %v379_v37, %v1330_v61  ;;  %v1435_v1 = vsel %vm1400_vm8, 1.0, %v1250_v27  ;;  %v1447_v7 = vsel %vm459_vm10, 1.0, %v1250_v27  ;;  %v1452_v8 = vsel %vm460_vm11, 1.0, %v1250_v27 }
  0x2f   :  { %v1427_v58 = vrot.slane %v283_v38, %v1315_v55  ;;  %vm926_vm3 = vcmask 1041409   ;;  %vm930_vm5 = vcmask 1043459   ;;  %vm934_vm7 = vcmask 1045509  }
  0x30   :  { %114 = vadd.xlane.f32.xlu1 %v113_v43  ;;  %v1386_v43 = vsel %vm1356_vm2, 1.0, %v1250_v27  ;;  %vm456_vm12 = vcmp.lt.s32.totalorder %v1312_v53, %v428_v57  ;;  %vm936_vm8 = vcmask 1046534   ;;  %vm1033_vm10 = vcmask 64512  }
  0x31   :  { %90 = vadd.xlane.f32.xlu0 %v89_v44  ;;  %v1391_v44 = vsel %vm1362_vm4, 1.0, %v1250_v27  ;;  %v1460_v12 = vrot.slane %v1427_v58, %v1315_v55  ;;  %v1471_v30 = vsel %vm456_vm12, 1.0, %v1250_v27  ;;  %vm928_vm4 = vcmask 1042434  }
  0x33   :  { %v400_v38 = vrot.slane %v1460_v12, %v1330_v61 }
  0x34   :  { %117 = vadd.xlane.f32.xlu1 %v116_v47 }
  0x35   :  { %93 = vadd.xlane.f32.xlu0 %v92_v48  ;;  %v1407_v48 = vsel %vm455_vm6, 1.0, %v1250_v27  ;;  %vm1599_vm14 = vcmp.lt.s32.totalorder %v1312_v53, %v400_v38  ;;  %vm932_vm6 = vcmask 1044484  }
  0xa5   :  { %v97_v4 = vpop.xlane.xlu1 %96 }
  0xa6   :  { %v73_v5 = vpop.xlane.xlu0 %72  ;;  %1085 = vtanh.f32 %v97_v4  ;;  %v1441_v4 = vsel %vm1416_vm9, 1.0, %v1250_v27  ;;  %vm938_vm9 = vcmask 1047559  }
  0xa7   :  { %1087 = vtanh.f32 %v73_v5 }
  0xa9   :  { %v100_v14 = vpop.xlane.xlu1 %99 }
  0xaa   :  { %v76_v15 = vpop.xlane.xlu0 %75  ;;  %1089 = vtanh.f32 %v100_v14 }
  0xab   :  { %1091 = vtanh.f32 %v76_v15 }
  0xad   :  { %v103_v25 = vpop.xlane.xlu1 %102 }
  0xae   :  { %v79_v26 = vpop.xlane.xlu0 %78  ;;  %1093 = vtanh.f32 %v103_v25 }
  0xaf   :  { %1095 = vtanh.f32 %v79_v26 }
  0xb0   :  { %v1372_v34 = vpop.eup %1085 }
  0xb1   :  { %v1380_v39 = vpop.eup %1087  ;;  %v183_v40 = vrot.slane %v1372_v34, 4  ;;  %v106_v41 = vpop.xlane.xlu1 %105 }
  0xb2   :  { %v82_v42 = vpop.xlane.xlu0 %81  ;;  %v135_v46 = vrot.slane %v1380_v39, 4 }
  0xb3   :  { %1097 = vtanh.f32 %v82_v42  ;;  %v184_v51 = vmax.f32 %v1372_v34, %v183_v40 }
  0xb4   :  { %v1421_v54 = vpop.eup %1089  ;;  %v136_v56 = vmax.f32 %v1380_v39, %v135_v46  ;;  %1099 = vtanh.f32 %v106_v41 }
  0xb5   :  { %v1429_v59 = vpop.eup %1091  ;;  %v189_v60 = vrot.slane %v1421_v54, 4  ;;  %v109_v62 = vpop.xlane.xlu1 %108  ;;  %v185_v0 = vrot.slane %v184_v51, 2 }
  0xb6   :  { %v85_v63 = vpop.xlane.xlu0 %84  ;;  %v141_v2 = vrot.slane %v1429_v59, 4  ;;  %1101 = vtanh.f32 %v109_v62  ;;  %v137_v3 = vrot.slane %v136_v56, 2 }
  0xb7   :  { %v186_v5 = vmax.f32 %v184_v51, %v185_v0  ;;  %v190_v6 = vmax.f32 %v1421_v54, %v189_v60  ;;  %1103 = vtanh.f32 %v85_v63 }
  0xb8   :  { %v1454_v9 = vpop.eup %1093  ;;  %v138_v10 = vmax.f32 %v136_v56, %v137_v3  ;;  %v142_v11 = vmax.f32 %v1429_v59, %v141_v2 }
  0xb9   :  { %v1462_v13 = vpop.eup %1095  ;;  %v195_v14 = vrot.slane %v1454_v9, 4  ;;  %v112_v15 = vpop.xlane.xlu1 %111  ;;  %v187_v17 = vrot.slane %v186_v5, 1  ;;  %v191_v18 = vrot.slane %v190_v6, 2 }
  0xba   :  { %v88_v16 = vpop.xlane.xlu0 %87  ;;  %v147_v19 = vrot.slane %v1462_v13, 4  ;;  %1105 = vtanh.f32 %v112_v15  ;;  %v139_v20 = vrot.slane %v138_v10, 1  ;;  %v143_v21 = vrot.slane %v142_v11, 2 }
  0xbb   :  { %1107 = vtanh.f32 %v88_v16  ;;  %v188_v22 = vmax.f32 %v186_v5, %v187_v17  ;;  %v192_v23 = vmax.f32 %v190_v6, %v191_v18  ;;  %v196_v24 = vmax.f32 %v1454_v9, %v195_v14 }
  0xbc   :  { %v140_v25 = vmax.f32 %v138_v10, %v139_v20  ;;  %v144_v26 = vmax.f32 %v142_v11, %v143_v21  ;;  %v148_v29 = vmax.f32 %v1462_v13, %v147_v19 }
  0xbd   :  { %v1473_v31 = vpop.eup %1097  ;;  %v115_v32 = vpop.xlane.xlu1 %114  ;;  %v239_v33 = vsub.f32 %v1372_v34, %v188_v22  ;;  %v193_v36 = vrot.slane %v192_v23, 1  ;;  %v197_v37 = vrot.slane %v196_v24, 2  ;;  %v299_v34 = vcombine.high %v1427_v58, %v1427_v58 }
  0xbe   :  { %v153_v40 = vrot.slane %v1473_v31, 4  ;;  %1109 = vtanh.f32 %v115_v32  ;;  %v231_v41 = vsub.f32 %v1380_v39, %v140_v25  ;;  %v145_v42 = vrot.slane %v144_v26, 1  ;;  %v1480_v46 = vpop.eup %1099  ;;  %v91_v47 = vpop.xlane.xlu0 %90 }
  0xbf   :  { %v263_v51 = vmul.f32 1.442695, %v239_v33  ;;  %v194_v52 = vmax.f32 %v192_v23, %v193_v36  ;;  %v149_v56 = vrot.slane %v148_v29, 2  ;;  %v198_v63 = vmax.f32 %v196_v24, %v197_v37 }
  0xc0   :  { %v1484_v57 = vpop.eup %1101  ;;  %v247_v60 = vmul.f32 1.442695, %v231_v41  ;;  %v146_v62 = vmax.f32 %v144_v26, %v145_v42  ;;  %v154_v0 = vmax.f32 %v1473_v31, %v153_v40  ;;  %v201_v6 = vrot.slane %v1480_v46, 4 }
  0xc1   :  { %v207_v2 = vrot.slane %v1484_v57, 4  ;;  %v118_v39 = vpop.xlane.xlu1 %117  ;;  %1111 = vpow2.f32 %v263_v51  ;;  %v240_v3 = vsub.f32 %v1421_v54, %v194_v52  ;;  %v150_v5 = vmax.f32 %v148_v29, %v149_v56  ;;  %v1491_v14 = vpop.eup %1103 }
  0xc2   :  { %1113 = vtanh.f32 %v118_v39  ;;  %v232_v10 = vsub.f32 %v1429_v59, %v146_v62  ;;  %v199_v11 = vrot.slane %v198_v63, 1  ;;  %v155_v20 = vrot.slane %v154_v0, 2  ;;  %v94_v59 = vpop.xlane.xlu0 %93 }
  0xc3   :  { %1115 = vtanh.f32 %v91_v47  ;;  %v265_v15 = vmul.f32 1.442695, %v240_v3  ;;  %v208_v16 = vmax.f32 %v1484_v57, %v207_v2  ;;  %v151_v17 = vrot.slane %v150_v5, 1 }
  0xc4   :  { %v1494_v18 = vpop.eup %1105  ;;  %1117 = vpow2.f32 %v247_v60  ;;  %v249_v19 = vmul.f32 1.442695, %v232_v10  ;;  %v200_v54 = vmax.f32 %v198_v63, %v199_v11  ;;  %v159_v25 = vrot.slane %v1491_v14, 4 }
  0xc5   :  { %v1496_v21 = vpop.eup %1107  ;;  %v213_v22 = vrot.slane %v1494_v18, 4  ;;  %1119 = vpow2.f32 %v265_v15  ;;  %v209_v23 = vrot.slane %v208_v16, 2  ;;  %v152_v24 = vmax.f32 %v150_v5, %v151_v17 }
  0xc6   :  { %1121 = vpow2.f32 %v249_v19  ;;  %v241_v26 = vsub.f32 %v1454_v9, %v200_v54  ;;  %v156_v29 = vmax.f32 %v154_v0, %v155_v20  ;;  %v202_v37 = vmax.f32 %v1480_v46, %v201_v6 }
  0xc7   :  { %v210_v32 = vmax.f32 %v208_v16, %v209_v23  ;;  %v233_v33 = vsub.f32 %v1462_v13, %v152_v24  ;;  %v214_v36 = vmax.f32 %v1494_v18, %v213_v22  ;;  %v165_v41 = vrot.slane %v1496_v21, 4 }
  0xc8   :  { %v1504_v40 = vpop.eup %1109  ;;  %1123 = vtanh.f32 %v94_v59  ;;  %v267_v42 = vmul.f32 1.442695, %v241_v26  ;;  %v157_v47 = vrot.slane %v156_v29, 1  ;;  %v203_v62 = vrot.slane %v202_v37, 2 }
  0xc9   :  { %v219_v51 = vrot.slane %v1504_v40, 4  ;;  %v211_v52 = vrot.slane %v210_v32, 1  ;;  %v251_v56 = vmul.f32 1.442695, %v233_v33  ;;  %v215_v9 = vrot.slane %v214_v36, 2 }
  0xca   :  { %1125 = vpow2.f32 %v267_v42  ;;  %v158_v60 = vmax.f32 %v156_v29, %v157_v47  ;;  %v1509_v13 = vmax.f32 %v1491_v14, %v159_v25  ;;  %v1518_v10 = vmax.f32 %v202_v37, %v203_v62 }
  0xcb   :  { %v1112_v63 = vpop.eup %1111  ;;  %v212_v0 = vmax.f32 %v210_v32, %v211_v52  ;;  %1127 = vpow2.f32 %v251_v56  ;;  %v216_v2 = vmax.f32 %v214_v36, %v215_v9  ;;  %v220_v39 = vmax.f32 %v1504_v40, %v219_v51 }
  0xcc   :  { %v1512_v3 = vpop.eup %1113  ;;  %v1515_v5 = vmul.f32 %v1112_v63, %v1375_v35  ;;  %v234_v6 = vsub.f32 %v1473_v31, %v158_v60  ;;  %v1521_v11 = vmax.f32 %v1496_v21, %v165_v41  ;;  %v205_v31 = vrot.slane %v1518_v10, 1 }
  0xcd   :  { %v1523_v15 = vpop.eup %1115  ;;  %v225_v16 = vrot.slane %v1512_v3, 4  ;;  %v243_v17 = vsub.f32 %v1484_v57, %v212_v0  ;;  %v217_v19 = vrot.slane %v216_v2, 1  ;;  %v221_v54 = vrot.slane %v220_v39, 2 }
  0xce   :  { %v1118_v20 = vpop.eup %1117  ;;  %v566_v35 = vsel %vm509_vm13, %v1515_v5, 0.0  ;;  %v253_v22 = vmul.f32 1.442695, %v234_v6  ;;  %v161_v59 = vrot.slane %v1509_v13, 2 }
  0xcf   :  { %v1120_v23 = vpop.eup %1119  ;;  %v1532_v24 = vmul.f32 %v1118_v20, %v1353_v28  ;;  %v567_v25 = vrot.slane %v566_v35, 4  ;;  %v271_v26 = vmul.f32 1.442695, %v243_v17  ;;  %v218_v29 = vmax.f32 %v216_v2, %v217_v19 }
  0xd0   :  { %v1122_v32 = vpop.eup %1121  ;;  %v1535_v57 = vmul.f32 %v1120_v23, %v1391_v44  ;;  %v222_v33 = vmax.f32 %v220_v39, %v221_v54  ;;  %1129 = vpow2.f32 %v253_v22  ;;  %v226_v36 = vmax.f32 %v1512_v3, %v225_v16 }
  0xd1   :  { %v510_v37 = vsel %vm509_vm13, %v1532_v24, 0.0  ;;  %v1541_v41 = vmul.f32 %v1122_v32, %v1386_v43  ;;  %v568_v42 = vadd.f32 %v567_v25, %v566_v35  ;;  %1131 = vpow2.f32 %v271_v26 }
  0xd2   :  { %v1543_v28 = vpop.eup %1123  ;;  %v511_v47 = vrot.slane %v510_v37, 4  ;;  %v573_v51 = vsel %vm509_vm13, %v1535_v57, 0.0  ;;  %v244_v44 = vsub.f32 %v1494_v18, %v218_v29  ;;  %v223_v52 = vrot.slane %v222_v33, 1 }
  0xd3   :  { %v517_v56 = vsel %vm509_vm13, %v1541_v41, 0.0  ;;  %v569_v9 = vrot.slane %v568_v42, 2  ;;  %v574_v60 = vrot.slane %v573_v51, 4  ;;  %v227_v62 = vrot.slane %v226_v36, 2 }
  0xd4   :  { %v1126_v63 = vpop.eup %1125  ;;  %v512_v43 = vadd.f32 %v511_v47, %v510_v37  ;;  %v518_v0 = vrot.slane %v517_v56, 4  ;;  %v273_v2 = vmul.f32 1.442695, %v244_v44  ;;  %v224_v39 = vmax.f32 %v222_v33, %v223_v52 }
  0xd5   :  { %v1128_v6 = vpop.eup %1127  ;;  %v570_v16 = vadd.f32 %v569_v9, %v568_v42  ;;  %v575_v17 = vadd.f32 %v574_v60, %v573_v51  ;;  %v1551_v19 = vmul.f32 %v1126_v63, %v1407_v48  ;;  %v228_v54 = vmax.f32 %v226_v36, %v227_v62 }
  0xd6   :  { %v513_v18 = vrot.slane %v512_v43, 2  ;;  %v519_v20 = vadd.f32 %v518_v0, %v517_v56  ;;  %v1554_v35 = vmul.f32 %v1128_v6, %v1396_v45  ;;  %1133 = vpow2.f32 %v273_v2 }
  0xd7   :  { %v571_v22 = vrot.slane %v570_v16, 1  ;;  %v576_v23 = vrot.slane %v575_v17, 2  ;;  %v580_v25 = vsel %vm509_vm13, %v1551_v19, 0.0  ;;  %v245_v26 = vsub.f32 %v1504_v40, %v224_v39 }
  0xd8   :  { %v514_v29 = vadd.f32 %v513_v18, %v512_v43  ;;  %v520_v32 = vrot.slane %v519_v20, 2  ;;  %v524_v48 = vsel %vm509_vm13, %v1554_v35, 0.0  ;;  %v581_v33 = vrot.slane %v580_v25, 4 }
  0xd9   :  { %v572_v36 = vadd.f32 %v571_v22, %v570_v16  ;;  %v577_v37 = vadd.f32 %v576_v23, %v575_v17  ;;  %v525_v42 = vrot.slane %v524_v48, 4  ;;  %v275_v47 = vmul.f32 1.442695, %v245_v26 }
  0xda   :  { %v1130_v45 = vpop.eup %1129  ;;  %v515_v51 = vrot.slane %v514_v29, 1  ;;  %v521_v44 = vadd.f32 %v520_v32, %v519_v20  ;;  %v582_v52 = vadd.f32 %v581_v33, %v580_v25  ;;  %v229_v56 = vrot.slane %v228_v54, 1 }
  0xdb   :  { %v1132_v9 = vpop.eup %1131  ;;  %1135 = vrcp.f32 %v572_v36  ;;  %v578_v60 = vrot.slane %v577_v37, 1  ;;  %v526_v62 = vadd.f32 %v525_v42, %v524_v48  ;;  %v1562_v40 = vmul.f32 %v1130_v45, %v1412_v49 }
  0xdc   :  { %v516_v63 = vadd.f32 %v515_v51, %v514_v29  ;;  %v522_v43 = vrot.slane %v521_v44, 1  ;;  %v1565_v0 = vmul.f32 %v1132_v9, %v1435_v1  ;;  %v583_v2 = vrot.slane %v582_v52, 2 }
  0xdd   :  { %v1567_v39 = vadd.f32 %v578_v60, %v577_v37  ;;  %v527_v6 = vrot.slane %v526_v62, 2  ;;  %1137 = vpow2.f32 %v275_v47  ;;  %v531_v16 = vsel %vm509_vm13, %v1562_v40, 0.0 }
  0xde   :  { %1139 = vrcp.f32 %v516_v63  ;;  %v523_v17 = vadd.f32 %v522_v43, %v521_v44  ;;  %v594_v18 = vsel %vm509_vm13, %v1565_v0, 0.0  ;;  %v584_v49 = vadd.f32 %v583_v2, %v582_v52 }
  0xdf   :  { %1141 = vrcp.f32 %v1567_v39  ;;  %v595_v20 = vrot.slane %v594_v18, 4  ;;  %v528_v22 = vadd.f32 %v527_v6, %v526_v62  ;;  %v532_v1 = vrot.slane %v531_v16, 4 }
  0xe0   :  { %v1134_v23 = vpop.eup %1133  ;;  %1143 = vrcp.f32 %v523_v17  ;;  %v585_v25 = vrot.slane %v584_v49, 1  ;;  %v230_v26 = vmax.f32 %v228_v54, %v229_v56  ;;  %v206_v29 = vmax.f32 %v1518_v10, %v205_v31 }
  0xe1   :  { %v596_v32 = vadd.f32 %v595_v20, %v594_v18  ;;  %v529_v48 = vrot.slane %v528_v22, 1  ;;  %v1578_v33 = vmul.f32 %v1134_v23, %v1441_v4  ;;  %v533_v37 = vadd.f32 %v532_v1, %v531_v16 }
  0xe2   :  { %v1580_v42 = vadd.f32 %v585_v25, %v584_v49  ;;  %v246_v47 = vsub.f32 %v1512_v3, %v230_v26  ;;  %v242_v45 = vsub.f32 %v1480_v46, %v206_v29  ;;  %v162_v54 = vmax.f32 %v1509_v13, %v161_v59 }
  0xe3   :  { %v597_v51 = vrot.slane %v596_v32, 2  ;;  %v530_v44 = vadd.f32 %v529_v48, %v528_v22  ;;  %v601_v10 = vsel %vm509_vm13, %v1578_v33, 0.0  ;;  %v534_v31 = vrot.slane %v533_v37, 2 }
  0xe4   :  { %v602_v52 = vrot.slane %v601_v10, 4  ;;  %1145 = vrcp.f32 %v1580_v42  ;;  %v277_v4 = vmul.f32 1.442695, %v246_v47  ;;  %v269_v56 = vmul.f32 1.442695, %v242_v45 }
  0xe5   :  { %v1136_v9 = vpop.eup %1135  ;;  %v598_v60 = vadd.f32 %v597_v51, %v596_v32  ;;  %1147 = vrcp.f32 %v530_v44  ;;  %v535_v3 = vadd.f32 %v534_v31, %v533_v37  ;;  %v163_v46 = vrot.slane %v162_v54, 1 }
  0xe6   :  { %v646_v62 = vmul.f32 %v1136_v9, %v572_v36  ;;  %v603_v43 = vadd.f32 %v602_v52, %v601_v10  ;;  %1149 = vpow2.f32 %v277_v4  ;;  %v167_v13 = vrot.slane %v1521_v11, 2 }
  0xe7   :  { %v1138_v59 = vpop.eup %1137  ;;  %v599_v2 = vrot.slane %v598_v60, 1  ;;  %v536_v6 = vrot.slane %v535_v3, 1  ;;  %1151 = vpow2.f32 %v269_v56  ;;  %v164_v16 = vmax.f32 %v162_v54, %v163_v46 }
  0xe8   :  { %v1140_v18 = vpop.eup %1139  ;;  %v171_v49 = vrot.slane %v1523_v15, 4  ;;  %v604_v20 = vrot.slane %v603_v43, 2  ;;  %v1593_v22 = vmul.f32 %v1138_v59, %v1447_v7  ;;  %v662_v25 = vsub.f32 2.0, %v646_v62 }
  0xe9   :  { %v1142_v1 = vpop.eup %1141  ;;  %v638_v23 = vmul.f32 %v1140_v18, %v516_v63  ;;  %v600_v26 = vadd.f32 %v599_v2, %v598_v60  ;;  %v1603_v29 = vadd.f32 %v536_v6, %v535_v3  ;;  %v235_v37 = vsub.f32 %v1491_v14, %v164_v16 }
  0xea   :  { %v1144_v32 = vpop.eup %1143  ;;  %v605_v48 = vadd.f32 %v604_v20, %v603_v43  ;;  %v608_v7 = vsel %vm509_vm13, %v1593_v22, 0.0  ;;  %v168_v47 = vmax.f32 %v1521_v11, %v167_v13  ;;  %v1613_v63 = vsel %vm1599_vm14, 1.0, %v1250_v27 }
  0xeb   :  { %v654_v45 = vsub.f32 2.0, %v638_v23  ;;  %v639_v38 = vmul.f32 %v1144_v32, %v523_v17  ;;  %1153 = vrcp.f32 %v600_v26  ;;  %v609_v54 = vrot.slane %v608_v7, 4 }
  0xec   :  { %v606_v51 = vrot.slane %v605_v48, 1  ;;  %1155 = vrcp.f32 %v1603_v29  ;;  %v1619_v10 = vrot.slane %v299_v34, %v1315_v55  ;;  %v647_v17 = vmul.f32 %v1142_v1, %v1567_v39 }
  0xed   :  { %v670_v14 = vmul.f32 %v1140_v18, %v654_v45  ;;  %v655_v11 = vsub.f32 2.0, %v639_v38  ;;  %v610_v31 = vadd.f32 %v609_v54, %v608_v7  ;;  %v678_v4 = vmul.f32 %v1136_v9, %v662_v25 }
  0xee   :  { %v1622_v52 = vpop.eup %1145  ;;  %v607_v56 = vadd.f32 %v606_v51, %v605_v48  ;;  %v255_v60 = vmul.f32 1.442695, %v235_v37  ;;  %v169_v3 = vrot.slane %v168_v47, 1  ;;  %v172_v58 = vmax.f32 %v1523_v15, %v171_v49 }
  0xef   :  { %v1148_v46 = vpop.eup %1147  ;;  %v686_v62 = vmul.f32 %v670_v14, %v1532_v24  ;;  %v671_v43 = vmul.f32 %v1144_v32, %v655_v11  ;;  %v611_v13 = vrot.slane %v610_v31, 2  ;;  %v177_v34 = vrot.slane %v1543_v28, 4 }
  0xf0   :  { %v1150_v55 = vpop.eup %1149  ;;  %v640_v59 = vmul.f32 %v1148_v46, %v530_v44  ;;  %1157 = vrcp.f32 %v607_v56  ;;  %v170_v39 = vmax.f32 %v168_v47, %v169_v3  ;;  %v663_v6 = vsub.f32 2.0, %v647_v17 }
  0xf1   :  { %v1152_v2 = vpop.eup %1151  ;;  %704 = vperm.xlu0 %1081, %v686_v62   ;;  %v687_v9 = vmul.f32 %v671_v43, %v1541_v41  ;;  %v612_v16 = vadd.f32 %v611_v13, %v610_v31  ;;  %v1629_v18 = vmul.f32 %v1150_v55, %v1452_v8  ;;  %v694_v24 = vmul.f32 %v678_v4, %v1515_v5 }
  0xf2   :  { %v1633_v20 = vmul.f32 %v1152_v2, %v1471_v30  ;;  %1159 = vpow2.f32 %v255_v60  ;;  %v236_v49 = vsub.f32 %v1496_v21, %v170_v39  ;;  %v648_v44 = vmul.f32 %v1622_v52, %v1580_v42 }
  0xf3   :  { %709 = vperm.xlu1 %1082, %v687_v9   ;;  %v613_v36 = vrot.slane %v612_v16, 1  ;;  %v615_v41 = vsel %vm509_vm13, %v1629_v18, 0.0  ;;  %v173_v23 = vrot.slane %v172_v58, 2  ;;  %v656_v25 = vsub.f32 2.0, %v640_v59 }
  0xf4   :  { %v616_v8 = vrot.slane %v615_v41, 4  ;;  %v587_v5 = vsel %vm509_vm13, %v1633_v20, 0.0  ;;  %v257_v32 = vmul.f32 1.442695, %v236_v49  ;;  %v679_v48 = vmul.f32 %v1142_v1, %v663_v6 }
  0xf5   :  { %v1154_v30 = vpop.eup %1153  ;;  %v614_v7 = vadd.f32 %v613_v36, %v612_v16  ;;  %v588_v37 = vrot.slane %v587_v5, 4  ;;  %v174_v21 = vmax.f32 %v172_v58, %v173_v23  ;;  %v404_v42 = vrot.slane %v1619_v10, %v1330_v61 }
  0xf6   :  { %v1156_v47 = vpop.eup %1155  ;;  %v650_v45 = vmul.f32 %v1154_v30, %v600_v26  ;;  %v617_v38 = vadd.f32 %v616_v8, %v615_v41  ;;  %1161 = vpow2.f32 %v257_v32  ;;  %v664_v54 = vsub.f32 2.0, %v648_v44 }
  0xf7   :  { %744 = vperm.xlu1 %1082, %v694_v24   ;;  %1163 = vrcp.f32 %v614_v7  ;;  %v589_v51 = vadd.f32 %v588_v37, %v587_v5  ;;  %v175_v14 = vrot.slane %v174_v21, 1  ;;  %v672_v17 = vmul.f32 %v1148_v46, %v656_v25 }
  0xf8   :  { %v666_v11 = vsub.f32 2.0, %v650_v45  ;;  %v618_v31 = vrot.slane %v617_v38, 2  ;;  %v178_v1 = vmax.f32 %v1543_v28, %v177_v34  ;;  %v695_v4 = vmul.f32 %v679_v48, %v1535_v57 }
  0xf9   :  { %v641_v60 = vmul.f32 %v1156_v47, %v1603_v29  ;;  %v590_v26 = vrot.slane %v589_v51, 2  ;;  %v176_v3 = vmax.f32 %v174_v21, %v175_v14  ;;  %vm1648_vm15 = vcmp.lt.s32.totalorder %v1312_v53, %v404_v42 }
  0xfa   :  { %v1158_v62 = vpop.eup %1157  ;;  %v682_v43 = vmul.f32 %v1154_v30, %v666_v11  ;;  %v619_v13 = vadd.f32 %v618_v31, %v617_v38  ;;  %v179_v55 = vrot.slane %v178_v1, 2  ;;  %v680_v59 = vmul.f32 %v1622_v52, %v664_v54 }
  0xfb   :  { %749 = vperm.xlu1 %1082, %v695_v4   ;;  %v651_v46 = vmul.f32 %v1158_v62, %v607_v56  ;;  %v591_v34 = vadd.f32 %v590_v26, %v589_v51  ;;  %v237_v57 = vsub.f32 %v1523_v15, %v176_v3  ;;  %v688_v2 = vmul.f32 %v672_v17, %v1554_v35 }
  0xfc   :  { %v1160_v39 = vpop.eup %1159  ;;  %v698_v29 = vmul.f32 %v682_v43, %v1565_v0  ;;  %v620_v9 = vrot.slane %v619_v13, 1  ;;  %v180_v6 = vmax.f32 %v178_v1, %v179_v55  ;;  %v657_v24 = vsub.f32 2.0, %v641_v60 }
  0xfd   :  { %v667_v16 = vsub.f32 2.0, %v651_v46  ;;  %v592_v49 = vrot.slane %v591_v34, 1  ;;  %v1657_v44 = vmul.f32 %v1160_v39, %v1613_v63  ;;  %v1063_v52 = vsel %vm1648_vm15, 1.0, %v1250_v27 }
  0xfe   :  { %764 = vperm.xlu0 %1081, %v698_v29   ;;  %v621_v56 = vadd.f32 %v620_v9, %v619_v13  ;;  %v259_v15 = vmul.f32 1.442695, %v237_v57  ;;  %v181_v36 = vrot.slane %v180_v6, 1  ;;  %v329_v23 = vcombine.high %v1460_v12, %v1460_v12 }
  0xff   :  { %714 = vperm.xlu1 %1082, %v688_v2   ;;  %v683_v0 = vmul.f32 %v1158_v62, %v667_v16  ;;  %v593_v41 = vadd.f32 %v592_v49, %v591_v34  ;;  %v538_v35 = vsel %vm509_vm13, %v1657_v44, 0.0  ;;  %v696_v63 = vmul.f32 %v680_v59, %v1551_v19 }
 0x100   :  { %v1162_v25 = vpop.eup %1161  ;;  %1165 = vrcp.f32 %v621_v56  ;;  %v539_v8 = vrot.slane %v538_v35, 4  ;;  %v182_v5 = vmax.f32 %v180_v6, %v181_v36  ;;  %v673_v48 = vmul.f32 %v1156_v47, %v657_v24 }
 0x101   :  { %v1164_v32 = vpop.eup %1163  ;;  %v699_v30 = vmul.f32 %v683_v0, %v1578_v33  ;;  %1167 = vrcp.f32 %v593_v41  ;;  %v1668_v37 = vmul.f32 %v1162_v25, %v1063_v52  ;;  %v408_v19 = vrot.slane %v329_v23, %v1330_v61 }
 0x102   :  { %v652_v21 = vmul.f32 %v1164_v32, %v614_v7  ;;  %v540_v45 = vadd.f32 %v539_v8, %v538_v35  ;;  %1169 = vpow2.f32 %v259_v15  ;;  %v238_v38 = vsub.f32 %v1543_v28, %v182_v5 }
 0x103   :  { %769 = vperm.xlu0 %1081, %v699_v30   ;;  %754 = vperm.xlu1 %1082, %v696_v63   ;;  %v545_v12 = vsel %vm509_vm13, %v1668_v37, 0.0  ;;  %v331_v42 = vcombine.high %v1619_v10, %v1619_v10  ;;  %v689_v7 = vmul.f32 %v673_v48, %v1562_v40  ;;  %vm451_vm1 = vcmp.lt.s32.totalorder %v1312_v53, %v408_v19 }
 0x104   :  { %v668_v33 = vsub.f32 2.0, %v652_v21  ;;  %v541_v47 = vrot.slane %v540_v45, 2  ;;  %v546_v54 = vrot.slane %v545_v12, 4  ;;  %v261_v51 = vmul.f32 1.442695, %v238_v38 }
 0x105   :  { %v412_v28 = vrot.slane %v331_v42, %v1330_v61  ;;  %v1064_v3 = vsel %vm451_vm1, 1.0, %v1250_v27 }
 0x106   :  { %v684_v14 = vmul.f32 %v1164_v32, %v668_v33  ;;  %v542_v11 = vadd.f32 %v541_v47, %v540_v45  ;;  %v547_v17 = vadd.f32 %v546_v54, %v545_v12  ;;  %1171 = vpow2.f32 %v261_v51 }
 0x107   :  { %719 = vperm.xlu1 %1082, %v689_v7   ;;  %vm452_vm2 = vcmp.lt.s32.totalorder %v1312_v53, %v412_v28 }
 0x108   :  { %v700_v31 = vmul.f32 %v684_v14, %v1593_v22  ;;  %v543_v1 = vrot.slane %v542_v11, 1  ;;  %v548_v4 = vrot.slane %v547_v17, 2  ;;  %v1065_v59 = vsel %vm452_vm2, 1.0, %v1250_v27 }
 0x10a   :  { %v1166_v10 = vpop.eup %1165  ;;  %774 = vperm.xlu0 %1081, %v700_v31   ;;  %v544_v60 = vadd.f32 %v543_v1, %v542_v11  ;;  %v549_v26 = vadd.f32 %v548_v4, %v547_v17  ;;  %v1181_v1 = vld [vmem:[#allocation2 + $0x40] sm:$0xff] }
 0x10b   :  { %v1168_v40 = vpop.eup %1167  ;;  %v653_v62 = vmul.f32 %v1166_v10, %v621_v56 }
 0x10c   :  { %v1170_v43 = vpop.eup %1169  ;;  %v649_v13 = vmul.f32 %v1168_v40, %v593_v41  ;;  %1173 = vrcp.f32 %v544_v60  ;;  %v550_v58 = vrot.slane %v549_v26, 1 }
 0x10d   :  { %v669_v55 = vsub.f32 2.0, %v653_v62  ;;  %v499_v61 = vmul.f32 %v1170_v43, %v1064_v3  ;;  %v1183_v3 = vld [vmem:[#allocation2 + $0x50] sm:$0xff] }
 0x10e   :  { %v665_v46 = vsub.f32 2.0, %v649_v13  ;;  %v551_v22 = vadd.f32 %v550_v58, %v549_v26  ;;  %v1184_v58 = vld [vmem:[#allocation2 + $0x60] sm:$0xff] }
 0x10f   :  { %v685_v34 = vmul.f32 %v1166_v10, %v669_v55  ;;  %v552_v57 = vsel %vm509_vm13, %v499_v61, 0.0  ;;  %v1182_v10 = vld [vmem:[#allocation2 + $0x48] sm:$0xff] }
 0x110   :  { %v1172_v39 = vpop.eup %1171  ;;  %v681_v29 = vmul.f32 %v1168_v40, %v665_v46  ;;  %1175 = vrcp.f32 %v551_v22  ;;  %v553_v2 = vrot.slane %v552_v57, 4 }
 0x111   :  { %v701_v9 = vmul.f32 %v685_v34, %v1629_v18  ;;  %v500_v6 = vmul.f32 %v1172_v39, %v1065_v59  ;;  %v1185_v34 = vld [vmem:[#allocation2 + $0x68] sm:$0xff] }
 0x112   :  { %v697_v16 = vmul.f32 %v681_v29, %v1633_v20  ;;  %v554_v24 = vadd.f32 %v553_v2, %v552_v57 }
 0x113   :  { %779 = vperm.xlu0 %1081, %v701_v9   ;;  %v559_v49 = vsel %vm509_vm13, %v500_v6, 0.0 }
 0x114   :  { %759 = vperm.xlu1 %1082, %v697_v16   ;;  %v555_v56 = vrot.slane %v554_v24, 2  ;;  %v560_v52 = vrot.slane %v559_v49, 4 }
 0x116   :  { %v1174_v27 = vpop.eup %1173  ;;  %v556_v15 = vadd.f32 %v555_v56, %v554_v24  ;;  %v561_v36 = vadd.f32 %v560_v52, %v559_v49 }
 0x117   :  { %v642_v0 = vmul.f32 %v1174_v27, %v544_v60 }
 0x118   :  { %v557_v41 = vrot.slane %v556_v15, 1  ;;  %v562_v35 = vrot.slane %v561_v36, 2 }
 0x119   :  { %v658_v23 = vsub.f32 2.0, %v642_v0 }
 0x11a   :  { %v1176_v25 = vpop.eup %1175  ;;  %v558_v63 = vadd.f32 %v557_v41, %v556_v15  ;;  %v563_v18 = vadd.f32 %v562_v35, %v561_v36 }
 0x11b   :  { %v674_v8 = vmul.f32 %v1174_v27, %v658_v23  ;;  %v643_v5 = vmul.f32 %v1176_v25, %v551_v22  ;;  %v952_v22 = vand.u32 127, %v279_v50 }
 0x11c   :  { %1177 = vrcp.f32 %v558_v63  ;;  %v564_v20 = vrot.slane %v563_v18, 1 }
 0x11d   :  { %v690_v32 = vmul.f32 %v674_v8, %v1657_v44  ;;  %v659_v30 = vsub.f32 2.0, %v643_v5  ;;  %v1710_v24 = vsub.s32 %v952_v22, %v1312_v53 }
 0x11e   :  { %v565_v48 = vadd.f32 %v564_v20, %v563_v18 }
 0x11f   :  { %724 = vperm.xlu1 %1082, %v690_v32   ;;  %v675_v21 = vmul.f32 %v1176_v25, %v659_v30 }
 0x120   :  { %1179 = vrcp.f32 %v565_v48 }
 0x121   :  { %v691_v45 = vmul.f32 %v675_v21, %v1668_v37  ;;  %v1187_v21 = vld [vmem:[#allocation2 + $0x78] sm:$0xff] }
 0x123   :  { %729 = vperm.xlu1 %1082, %v691_v45  }
 0x126   :  { %v1178_v38 = vpop.eup %1177 }
 0x127   :  { %v644_v12 = vmul.f32 %v1178_v38, %v558_v63 }
 0x129   :  { %v660_v19 = vsub.f32 2.0, %v644_v12 }
 0x12a   :  { %v1180_v42 = vpop.eup %1179 }
 0x12b   :  { %v676_v33 = vmul.f32 %v1178_v38, %v660_v19  ;;  %v645_v47 = vmul.f32 %v1180_v42, %v565_v48  ;;  %v1188_v19 = vld [vmem:[#allocation2 + $0x58] sm:$0xff] }
 0x12d   :  { %v692_v54 = vmul.f32 %v676_v33, %v499_v61  ;;  %v661_v51 = vsub.f32 2.0, %v645_v47 }
 0x12f   :  { %734 = vperm.xlu1 %1082, %v692_v54   ;;  %v677_v7 = vmul.f32 %v1180_v42, %v661_v51 }
 0x131   :  { %v693_v14 = vmul.f32 %v677_v7, %v500_v6  ;;  %v1186_v6 = vld [vmem:[#allocation2 + $0x70] sm:$0xff] }
 0x133   :  { %739 = vperm.xlu1 %1082, %v693_v14  }
 0x170   :  { %v1691_v17 = vpop.permute.xlu0 %704 }
 0x172   :  { %v1689_v44 = vpop.permute.xlu1 %709 }
 0x176   :  { %v745_v11 = vpop.permute.xlu1 %744 }
 0x177   :  { %v790_v4 = vmul.f32 %v1181_v1, %v745_v11  ;;  %v988_v35 = vrot.slane %v745_v11, %v1710_v24 }
 0x179   :  { %v854_v43 = vsel %vm70_vm0, %v790_v4, 0.0 }
 0x17a   :  { %v750_v28 = vpop.permute.xlu1 %749  ;;  %v855_v61 = vrot.slane %v854_v43, 4 }
 0x17b   :  { %v791_v60 = vmul.f32 %v1182_v10, %v750_v28  ;;  %v992_v15 = vrot.slane %v750_v28, %v1710_v24 }
 0x17c   :  { %v856_v9 = vadd.f32 %v855_v61, %v854_v43 }
 0x17d   :  { %v1693_v37 = vpop.permute.xlu0 %764  ;;  %v861_v13 = vsel %vm70_vm0, %v791_v60, 0.0  ;;  %v1024_v18 = vsel %vm926_vm3, %v992_v15, %v988_v35 }
 0x17e   :  { %v1695_v31 = vpop.permute.xlu1 %714  ;;  %v794_v55 = vmul.f32 %v1184_v58, %v1693_v37  ;;  %v862_v59 = vrot.slane %v861_v13, 4  ;;  %v857_v0 = vrot.slane %v856_v9, 2  ;;  %v1004_v32 = vrot.slane %v1693_v37, %v1710_v24 }
 0x180   :  { %v882_v29 = vsel %vm70_vm0, %v794_v55, 0.0  ;;  %v863_v49 = vadd.f32 %v862_v59, %v861_v13  ;;  %v858_v20 = vadd.f32 %v857_v0, %v856_v9 }
 0x181   :  { %v883_v50 = vrot.slane %v882_v29, 4 }
 0x182   :  { %v755_v26 = vpop.permute.xlu1 %754  ;;  %v1697_v62 = vpop.permute.xlu0 %769  ;;  %v864_v53 = vrot.slane %v863_v49, 2  ;;  %v859_v59 = vrot.slane %v858_v20, 1 }
 0x183   :  { %v792_v40 = vmul.f32 %v1183_v3, %v755_v26  ;;  %v795_v57 = vmul.f32 %v1185_v34, %v1697_v62  ;;  %v884_v25 = vadd.f32 %v883_v50, %v882_v29  ;;  %v996_v63 = vrot.slane %v755_v26, %v1710_v24  ;;  %v1189_v29 = vld [vmem:[#allocation2 + $0x8] sm:$0xff]  ;;  %v1191_v50 = vld [vmem:[#allocation2 + $0x10] sm:$0xff] }
 0x184   :  { %v865_v38 = vadd.f32 %v864_v53, %v863_v49  ;;  %v1008_v51 = vrot.slane %v1697_v62, %v1710_v24  ;;  %v1190_v49 = vld [vmem:[#allocation2] sm:$0xff]  ;;  %v1192_v53 = vld [vmem:[#allocation2 + $0x18] sm:$0xff] }
 0x185   :  { %v868_v46 = vsel %vm70_vm0, %v792_v40, 0.0  ;;  %v889_v56 = vsel %vm70_vm0, %v795_v57, 0.0  ;;  %v885_v47 = vrot.slane %v884_v25, 2  ;;  %v1025_v54 = vsel %vm928_vm4, %v996_v63, %v1024_v18  ;;  %v1193_v18 = vld [vmem:[#allocation2 + $0x20] sm:$0xff] }
 0x186   :  { %v869_v2 = vrot.slane %v868_v46, 4  ;;  %v1713_v52 = vpop.permute.xlu1 %719  ;;  %v890_v41 = vrot.slane %v889_v56, 4  ;;  %v866_v43 = vrot.slane %v865_v38, 1 }
 0x187   :  { %v886_v55 = vadd.f32 %v885_v47, %v884_v25  ;;  %v1194_v47 = vld [vmem:[#allocation2 + $0x28] sm:$0xff] }
 0x188   :  { %v870_v36 = vadd.f32 %v869_v2, %v868_v46  ;;  %v891_v30 = vadd.f32 %v890_v41, %v889_v56  ;;  %v783_v2 = vmul.f32 %v1189_v29, %v1689_v44  ;;  %v867_v9 = vadd.f32 %v866_v43, %v865_v38 }
 0x189   :  { %v1705_v39 = vpop.permute.xlu0 %774  ;;  %v782_v56 = vmul.f32 %v1190_v49, %v1691_v17  ;;  %v887_v15 = vrot.slane %v886_v55, 1  ;;  %v860_v41 = vadd.f32 %v859_v59, %v858_v20  ;;  %v964_v59 = vrot.slane %v1695_v31, %v1710_v24 }
 0x18a   :  { %v796_v16 = vmul.f32 %v1186_v6, %v1705_v39  ;;  %v871_v8 = vrot.slane %v870_v36, 2  ;;  %v892_v1 = vrot.slane %v891_v30, 2  ;;  %v1012_v4 = vrot.slane %v1705_v39, %v1710_v24 }
 0x18b   :  { %v888_v20 = vadd.f32 %v887_v15, %v886_v55  ;;  %v968_v29 = vrot.slane %v1713_v52, %v1710_v24 }
 0x18c   :  { %v896_v27 = vsel %vm70_vm0, %v796_v16, 0.0  ;;  %v872_v14 = vadd.f32 %v871_v8, %v870_v36  ;;  %v893_v34 = vadd.f32 %v892_v1, %v891_v30 }
 0x18d   :  { %v897_v23 = vrot.slane %v896_v27, 4 }
 0x18e   :  { %v873_v61 = vrot.slane %v872_v14, 1  ;;  %v894_v35 = vrot.slane %v893_v34, 1 }
 0x18f   :  { %v898_v12 = vadd.f32 %v897_v23, %v896_v27  ;;  %v784_v27 = vmul.f32 %v1191_v50, %v1695_v31  ;;  %v785_v23 = vmul.f32 %v1192_v53, %v1713_v52  ;;  %v1195_v31 = vld [vmem:[#allocation2 + $0x30] sm:$0xff] }
 0x190   :  { %v874_v36 = vadd.f32 %v873_v61, %v872_v14  ;;  %v960_v61 = vrot.slane %v1689_v44, %v1710_v24 }
 0x191   :  { %v899_v26 = vrot.slane %v898_v12, 2 }
 0x192   :  { %v780_v5 = vpop.permute.xlu0 %779 }
 0x193   :  { %v760_v48 = vpop.permute.xlu1 %759  ;;  %v797_v45 = vmul.f32 %v1187_v21, %v780_v5  ;;  %v1016_v62 = vrot.slane %v780_v5, %v1710_v24  ;;  %v900_v39 = vadd.f32 %v899_v26, %v898_v12  ;;  %v805_v5 = vsel %vm70_vm0, %v783_v2, 0.0 }
 0x194   :  { %v793_v42 = vmul.f32 %v1188_v19, %v760_v48  ;;  %v1000_v33 = vrot.slane %v760_v48, %v1710_v24  ;;  %v798_v21 = vsel %vm70_vm0, %v782_v56, 0.0  ;;  %v895_v19 = vadd.f32 %v894_v35, %v893_v34 }
 0x195   :  { %v903_v7 = vsel %vm70_vm0, %v797_v45, 0.0  ;;  %v901_v63 = vrot.slane %v900_v39, 1  ;;  %v812_v45 = vsel %vm70_vm0, %v784_v27, 0.0 }
 0x196   :  { %v875_v11 = vsel %vm70_vm0, %v793_v42, 0.0  ;;  %v1026_v28 = vsel %vm930_vm5, %v1000_v33, %v1025_v54  ;;  %v904_v37 = vrot.slane %v903_v7, 4  ;;  %v819_v42 = vsel %vm70_vm0, %v785_v23, 0.0 }
 0x197   :  { %v876_v10 = vrot.slane %v875_v11, 4  ;;  %v1027_v60 = vsel %vm932_vm6, %v1004_v32, %v1026_v28  ;;  %v940_v32 = vsel %vm926_vm3, %v867_v9, %v860_v41  ;;  %v813_v28 = vrot.slane %v812_v45, 4 }
 0x198   :  { %v1028_v3 = vsel %vm934_vm7, %v1008_v51, %v1027_v60  ;;  %v905_v40 = vadd.f32 %v904_v37, %v903_v7  ;;  %v941_v38 = vsel %vm928_vm4, %v874_v36, %v940_v32  ;;  %v806_v51 = vrot.slane %v805_v5, 4 }
 0x199   :  { %v877_v13 = vadd.f32 %v876_v10, %v875_v11  ;;  %v1029_v58 = vsel %vm936_vm8, %v1012_v4, %v1028_v3  ;;  %v902_v7 = vadd.f32 %v901_v63, %v900_v39  ;;  %v799_v10 = vrot.slane %v798_v21, 4 }
 0x19a   :  { %v906_v46 = vrot.slane %v905_v40, 2  ;;  %v1030_v22 = vsel %vm938_vm9, %v1016_v62, %v1029_v58  ;;  %v820_v60 = vrot.slane %v819_v42, 4  ;;  %v807_v62 = vadd.f32 %v806_v51, %v805_v5  ;;  %v1196_v5 = vld [vmem:[#allocation2 + $0x38] sm:$0xff] }
 0x19b   :  { %v878_v57 = vrot.slane %v877_v13, 2  ;;  %1035 = vst.msk [vmem:[%s1814_s4 + $0x8] sm:$0xff] %vm1033_vm10, %v1030_v22  ;;  %v800_v58 = vadd.f32 %v799_v10, %v798_v21 }
 0x19c   :  { %v907_v16 = vadd.f32 %v906_v46, %v905_v40  ;;  %v821_v55 = vadd.f32 %v820_v60, %v819_v42  ;;  %v808_v22 = vrot.slane %v807_v62, 2 }
 0x19d   :  { %v879_v6 = vadd.f32 %v878_v57, %v877_v13  ;;  %v814_v13 = vadd.f32 %v813_v28, %v812_v45  ;;  %v956_v57 = vrot.slane %v1691_v17, %v1710_v24  ;;  %v801_v2 = vrot.slane %v800_v58, 2 }
 0x19e   :  { %v1743_v0 = vpop.permute.xlu1 %724  ;;  %v908_v48 = vrot.slane %v907_v16, 1  ;;  %v822_v9 = vrot.slane %v821_v55, 2  ;;  %v809_v27 = vadd.f32 %v808_v22, %v807_v62 }
 0x19f   :  { %v880_v25 = vrot.slane %v879_v6, 1  ;;  %v786_v8 = vmul.f32 %v1193_v18, %v1743_v0  ;;  %v815_v39 = vrot.slane %v814_v13, 2  ;;  %v1017_v44 = vsel %vm926_vm3, %v960_v61, %v956_v57 }
 0x1a0   :  { %v909_v37 = vadd.f32 %v908_v48, %v907_v16  ;;  %v1018_v17 = vsel %vm928_vm4, %v964_v59, %v1017_v44  ;;  %v823_v53 = vadd.f32 %v822_v9, %v821_v55  ;;  %v810_v48 = vrot.slane %v809_v27, 1 }
 0x1a1   :  { %v881_v30 = vadd.f32 %v880_v25, %v879_v6  ;;  %v826_v14 = vsel %vm70_vm0, %v786_v8, 0.0  ;;  %v972_v6 = vrot.slane %v1743_v0, %v1710_v24  ;;  %v816_v52 = vadd.f32 %v815_v39, %v814_v13 }
 0x1a2   :  { %v730_v12 = vpop.permute.xlu1 %729  ;;  %v827_v3 = vrot.slane %v826_v14, 4  ;;  %v1019_v41 = vsel %vm930_vm5, %v968_v29, %v1018_v17  ;;  %v802_v0 = vadd.f32 %v801_v2, %v800_v58  ;;  %v811_v51 = vadd.f32 %v810_v48, %v809_v27 }
 0x1a3   :  { %v942_v33 = vsel %vm930_vm5, %v881_v30, %v941_v38  ;;  %v787_v54 = vmul.f32 %v1194_v47, %v730_v12  ;;  %v976_v56 = vrot.slane %v730_v12, %v1710_v24  ;;  %v1020_v23 = vsel %vm932_vm6, %v972_v6, %v1019_v41 }
 0x1a4   :  { %v943_v11 = vsel %vm932_vm6, %v888_v20, %v942_v33  ;;  %v828_v46 = vadd.f32 %v827_v3, %v826_v14  ;;  %v817_v38 = vrot.slane %v816_v52, 1  ;;  %v803_v42 = vrot.slane %v802_v0, 1 }
 0x1a5   :  { %v833_v1 = vsel %vm70_vm0, %v787_v54, 0.0  ;;  %v944_v4 = vsel %vm934_vm7, %v895_v19, %v943_v11  ;;  %v1021_v8 = vsel %vm934_vm7, %v976_v56, %v1020_v23  ;;  %v824_v33 = vrot.slane %v823_v53, 1 }
 0x1a6   :  { %v945_v26 = vsel %vm936_vm8, %v902_v7, %v944_v4  ;;  %v834_v43 = vrot.slane %v833_v1, 4  ;;  %v829_v49 = vrot.slane %v828_v46, 2  ;;  %v818_v28 = vadd.f32 %v817_v38, %v816_v52 }
 0x1a7   :  { %v946_v40 = vsel %vm938_vm9, %v909_v37, %v945_v26  ;;  %v804_v37 = vadd.f32 %v803_v42, %v802_v0 }
 0x1a8   :  { %950 = vst.msk [vmem:[#allocation5 + $0x8] sm:$0xff] %vm70_vm0, %v946_v40  ;;  %v835_v34 = vadd.f32 %v834_v43, %v833_v1  ;;  %v830_v18 = vadd.f32 %v829_v49, %v828_v46  ;;  %v825_v1 = vadd.f32 %v824_v33, %v823_v53 }
 0x1a9   :  { %v927_v26 = vsel %vm926_vm3, %v811_v51, %v804_v37 }
 0x1aa   :  { %v836_v15 = vrot.slane %v835_v34, 2  ;;  %v929_v62 = vsel %vm928_vm4, %v818_v28, %v927_v26 }
 0x1ab   :  { %v931_v13 = vsel %vm930_vm5, %v825_v1, %v929_v62 }
 0x1ac   :  { %v837_v21 = vadd.f32 %v836_v15, %v835_v34 }
 0x1ae   :  { %v735_v16 = vpop.permute.xlu1 %734  ;;  %v838_v7 = vrot.slane %v837_v21, 1 }
 0x1af   :  { %v788_v50 = vmul.f32 %v1195_v31, %v735_v16  ;;  %v980_v36 = vrot.slane %v735_v16, %v1710_v24 }
 0x1b0   :  { %v839_v3 = vadd.f32 %v838_v7, %v837_v21 }
 0x1b1   :  { %v840_v35 = vsel %vm70_vm0, %v788_v50, 0.0  ;;  %v1022_v20 = vsel %vm936_vm8, %v980_v36, %v1021_v8 }
 0x1b2   :  { %v841_v25 = vrot.slane %v840_v35, 4  ;;  %v740_v63 = vpop.permute.xlu1 %739 }
 0x1b3   :  { %v789_v32 = vmul.f32 %v1196_v5, %v740_v63  ;;  %v984_v30 = vrot.slane %v740_v63, %v1710_v24  ;;  %v831_v24 = vrot.slane %v830_v18, 1 }
 0x1b4   :  { %v842_v45 = vadd.f32 %v841_v25, %v840_v35 }
 0x1b5   :  { %v847_v12 = vsel %vm70_vm0, %v789_v32, 0.0  ;;  %v1023_v19 = vsel %vm938_vm9, %v984_v30, %v1022_v20  ;;  %v832_v60 = vadd.f32 %v831_v24, %v830_v18 }
 0x1b6   :  { %v843_v47 = vrot.slane %v842_v45, 2  ;;  %v848_v54 = vrot.slane %v847_v12, 4  ;;  %1034 = vst.msk [vmem:[%s1814_s4] sm:$0xff] %vm1033_vm10, %v1023_v19  ;;  %s1251_s4 = smov [#allocation5]  }
 0x1b7   :  { %s1041_s10 = sshll.u32 %s1251_s4, 4  ;;  %v933_v55 = vsel %vm932_vm6, %v832_v60, %v931_v13  ;;  %s1042_s10 = int_to_ptr.vmem [resolvable:$true] %s1041_s10 }
 0x1b8   :  { %v844_v14 = vadd.f32 %v843_v47, %v842_v45  ;;  %v849_v11 = vadd.f32 %v848_v54, %v847_v12  ;;  %v935_v46 = vsel %vm934_vm7, %v839_v3, %v933_v55  ;;  %s1219_s11 = scalar_lea.vmem %s1042_s10, 256  ;;  %p1224_p9 = scmp.lt.s32.totalorder %s1042_s10, %s1042_s10 }
 0x1b9   :  { %p1220_p8 = scmp.ne.s32.totalorder %s1042_s10, %s1219_s11  ;;  %p1225_p10 = scmp.lt.s32.totalorder %s1219_s11, %s1219_s11 }
 0x1ba   :  { %v845_v4 = vrot.slane %v844_v14, 1  ;;  %v850_v10 = vrot.slane %v849_v11, 2 }
 0x1bb   :  { %p1226_p11 = por %p1225_p10, %p1224_p9 }
 0x1bc   :  { %v851_v40 = vadd.f32 %v850_v10, %v849_v11  ;;  %v846_v43 = vadd.f32 %v845_v4, %v844_v14 }
 0x1bd   :  { %p1227_p12 = pnand %p1226_p11, %p1220_p8 }
 0x1be   :  { %v852_v58 = vrot.slane %v851_v40, 1  ;;  %v937_v22 = vsel %vm936_vm8, %v846_v43, %v935_v46 }
 0x1c0   :  { %v853_v61 = vadd.f32 %v852_v58, %v851_v40 }
 0x1c2   :  { %v939_v59 = vsel %vm938_vm9, %v853_v61, %v937_v22 }
 0x1c3   :  { %949 = vst.msk [vmem:[#allocation5] sm:$0xff] %vm70_vm0, %v939_v59 }
 0x1c4   :  { %1230 = shalt.err (!%p1227_p12)
}
 0x1c5   :  { %s1231_s14 = scalar_lea.hbm %s1813_s3, 256 }
 0x1c6   :  { %p1232_p13 = scmp.ne.s32.totalorder %s1813_s3, %s1231_s14  ;;  %p1235_p0 = scmp.lt.u32.totalorder %s1231_s14, %s1813_s3 }
 0x1c8   :  { %p1237_p1 = pnand %p1235_p0, %p1232_p13 }
 0x1ca   :  { %1240 = shalt.err (!%p1237_p1)
}
 0x1cb   :  { %1047 = dma.vmem_to_hbm [thread:$0]  %s1042_s10, 256, %s1813_s3, [#allocation4], %s1246_s25, %s1246_s25, %s1247_s26  }
 0x1cc   :  { %1243 = dma.done.wait [#allocation4], 256  }
 0x1cd   :  { %1244 = vsyncadd [#allocation4], 4294967040 }
 0x1ce   :  { %1055 = vsyncpa [#allocation3], 1 }
 0x1cf   :  { %1056 = vsyncpa [#allocation4], 1 }

</bundles_post_ra>
